<compile_context>
chip_gen: v6e
topology: v6e:2x2x1
jax: 0.10.0
libtpu: 0.0.40
codegen_flags: <defaults>
</compile_context>

<pallas_src>
import functools

import jax
import jax.numpy as jnp
from jax.experimental import pallas as pl
from jax.experimental.pallas import tpu as pltpu


def _decoder_kernel(latent, out_size, x_ref, w_ref, b_ref, o_ref):
    """One node tile of the 4-layer MLP.

    x_ref: (tm, latent) f32        -- node tile of x (natural layout)
    w_ref: (3*latent+out, latent) bf16 -- torch-layout [out,in] rows, stacked
    b_ref: (3*latent+out, 1) f32
    o_ref: (tm, out_size) f32      -- natural [nodes, out] store
    """
    x = x_ref[...].astype(jnp.bfloat16)                       # (tm, L)

    # Layer 1: h = relu(w1 @ x^T + b1) -> (L, tm); nodes land on the lane axis.
    w1 = w_ref[0:latent, :]
    acc = jax.lax.dot_general(w1, x, (((1,), (1,)), ((), ())),
                              preferred_element_type=jnp.float32)
    h = jnp.maximum(acc + b_ref[0:latent, :], 0.0).astype(jnp.bfloat16)

    off = latent
    for o, is_last in ((latent, False), (latent, False), (out_size, True)):
        w = w_ref[off:off + o, :]                             # (o, L) static sublane slice
        acc = jnp.dot(w, h, preferred_element_type=jnp.float32) + b_ref[off:off + o, :]
        if is_last:
            # (out, tm) -> (tm, out): one small transpose so the HBM store keeps
            # the module's natural [nodes, out] layout (no wrapper pass needed).
            o_ref[...] = jnp.transpose(acc).astype(o_ref.dtype)
        else:
            h = jnp.maximum(acc, 0.0).astype(jnp.bfloat16)
        off += o


def _round_up(x, m):
    return ((x + m - 1) // m) * m


def decoder_forward(x, params, *, tile_nodes=1024):
    """PyTorch Decoder.forward semantics: x [N, latent] f32 -> [N, out] f32."""
    (w1, b1), (w2, b2), (w3, b3), (w4, b4) = params  # torch layout: w [out,in], b [out]
    N, latent = x.shape
    out_size = w4.shape[0]

    # Fused resident weight / bias buffers (DMA'd once, reused across all tiles).
    w_all = jnp.concatenate([w1, w2, w3, w4], axis=0).astype(jnp.bfloat16)   # [3L+O, L]
    b_all = jnp.concatenate([b1, b2, b3, b4], axis=0).reshape(-1, 1)
    b_all = b_all.astype(jnp.float32)                                        # [3L+O, 1]

    # Node tile: multiple of 128 (nodes ride the lane axis inside the kernel).
    tm = max(128, min(_round_up(tile_nodes, 128), _round_up(N, 128)))
    Np = _round_up(N, tm)
    x_in = x if Np == N else jnp.pad(x, ((0, Np - N), (0, 0)))

    flops = 2 * Np * latent * (3 * latent + out_size)
    bytes_accessed = (Np * latent * 4 + int(w_all.size) * 2
                      + int(b_all.size) * 4 + Np * out_size * 4)

    out = pl.pallas_call(
        functools.partial(_decoder_kernel, latent, out_size),
        out_shape=jax.ShapeDtypeStruct((Np, out_size), jnp.float32),
        grid=(Np // tm,),
        in_specs=[
            pl.BlockSpec((tm, latent), lambda i: (i, 0)),     # node tile of x
            pl.BlockSpec(w_all.shape, lambda i: (0, 0)),      # fused weights (resident)
            pl.BlockSpec(b_all.shape, lambda i: (0, 0)),      # fused biases  (resident)
        ],
        out_specs=pl.BlockSpec((tm, out_size), lambda i: (i, 0)),
        compiler_params=pltpu.CompilerParams(
            dimension_semantics=("parallel",)),
        cost_estimate=pl.CostEstimate(flops=flops, transcendentals=0,
                                      bytes_accessed=bytes_accessed),
    )(x_in, w_all, b_all)

    if Np != N:
        out = out[:N]
    return out.astype(x.dtype)


def init_decoder_params(key, latent_size, out_size):
    """Deterministic synthetic params in torch nn.Linear layout (w: [out, in])."""
    dims = [(latent_size, latent_size),
            (latent_size, latent_size),
            (latent_size, latent_size),
            (latent_size, out_size)]
    params = []
    for fan_in, fan_out in dims:
        key, kw, kb = jax.random.split(key, 3)
        scale = 1.0 / jnp.sqrt(fan_in)
        w = jax.random.uniform(kw, (fan_out, fan_in), jnp.float32, -scale, scale)
        b = jax.random.uniform(kb, (fan_out,), jnp.float32, -scale, scale)
        params.append((w, b))
    return params


def decoder_ref(x, params):
    """Pure-JAX f32 reference of the PyTorch forward."""
    h = x
    for i, (w, b) in enumerate(params):
        h = h @ w.T + b
        if i < 3:
            h = jnp.maximum(h, 0.0)
    return h


if __name__ == "__main__":
    latent_size = 32
    out_size = 16
    num_nodes = 200   # graph.x: [num_nodes, latent_size]; ragged on purpose

    key = jax.random.PRNGKey(0)
    key, kx = jax.random.split(key)
    x = jax.random.normal(kx, (num_nodes, latent_size), jnp.float32)

    params = init_decoder_params(key, latent_size, out_size)

    out = jax.block_until_ready(decoder_forward(x, params))

    ref = decoder_ref(x, params)
    assert out.shape == (num_nodes, out_size)
    # bf16 MXU operands with f32 accumulation -> loosened tolerance vs f32 reference.
    assert jnp.allclose(out, ref, atol=3e-2, rtol=3e-2), \
        f"mismatch vs reference: max abs err {jnp.max(jnp.abs(out - ref))}"

    print("KERNEL_OK")
</pallas_src>

<mosaic_0001>
module attributes {stable_mosaic.version = 11 : i64} {
  func.func @_decoder_kernel(%arg0: i32, %arg1: memref<256x32xf32, #tpu.memory_space<vmem>>, %arg2: memref<112x32xbf16, #tpu.memory_space<vmem>>, %arg3: memref<112x1xf32, #tpu.memory_space<vmem>>, %arg4: memref<256x16xf32, #tpu.memory_space<vmem>>) attributes {dimension_semantics = [#tpu.dimension_semantics<parallel>], iteration_bounds = array<i64: 1>, scalar_prefetch = 0 : i64, scratch_operands = 0 : i64, tpu.core_type = #tpu.core_type<tc>, window_params = [{transform_indices = @transform_0, window_bounds = array<i64: 256, 32>}, {pipeline_mode = #tpu.pipeline_mode<synchronous>, transform_indices = @transform_1, window_bounds = array<i64: 112, 32>}, {pipeline_mode = #tpu.pipeline_mode<synchronous>, transform_indices = @transform_2, window_bounds = array<i64: 112, 1>}, {transform_indices = @transform_3, window_bounds = array<i64: 256, 16>}]} {
    %c0 = arith.constant 0 : index
    %c0_0 = arith.constant 0 : index
    %0 = vector.load %arg1[%c0, %c0_0] : memref<256x32xf32, #tpu.memory_space<vmem>>, vector<256x32xf32>
    %1 = arith.truncf %0 : vector<256x32xf32> to vector<256x32xbf16>
    %c0_1 = arith.constant 0 : index
    %c0_2 = arith.constant 0 : index
    %2 = vector.load %arg2[%c0_1, %c0_2] : memref<112x32xbf16, #tpu.memory_space<vmem>>, vector<32x32xbf16>
    %cst = arith.constant dense<0.000000e+00> : vector<32x256xf32>
    %3 = tpu.matmul %2, %1, %cst {dimension_numbers = #tpu.dot_dimension_numbers<[1], [1], [0], [0], [0, 0, 1, 0], [], []>} : vector<32x32xbf16>, vector<256x32xbf16>, vector<32x256xf32> -> vector<32x256xf32>
    %c0_3 = arith.constant 0 : index
    %c0_4 = arith.constant 0 : index
    %4 = vector.load %arg3[%c0_3, %c0_4] : memref<112x1xf32, #tpu.memory_space<vmem>>, vector<32x1xf32>
    %5 = vector.broadcast %4 : vector<32x1xf32> to vector<32x256xf32>
    %6 = arith.addf %3, %5 : vector<32x256xf32>
    %cst_5 = arith.constant 0.000000e+00 : f32
    %7 = vector.broadcast %cst_5 : f32 to vector<32x256xf32>
    %8 = arith.maximumf %6, %7 : vector<32x256xf32>
    %9 = arith.truncf %8 : vector<32x256xf32> to vector<32x256xbf16>
    %c32 = arith.constant 32 : index
    %c0_6 = arith.constant 0 : index
    %10 = vector.load %arg2[%c32, %c0_6] : memref<112x32xbf16, #tpu.memory_space<vmem>>, vector<32x32xbf16>
    %cst_7 = arith.constant dense<0.000000e+00> : vector<32x256xf32>
    %11 = tpu.matmul %10, %9, %cst_7 {dimension_numbers = #tpu.dot_dimension_numbers<[1], [0], [0], [1], [0, 0, 1, 1], [], []>} : vector<32x32xbf16>, vector<32x256xbf16>, vector<32x256xf32> -> vector<32x256xf32>
    %c32_8 = arith.constant 32 : index
    %c0_9 = arith.constant 0 : index
    %12 = vector.load %arg3[%c32_8, %c0_9] : memref<112x1xf32, #tpu.memory_space<vmem>>, vector<32x1xf32>
    %13 = vector.broadcast %12 : vector<32x1xf32> to vector<32x256xf32>
    %14 = arith.addf %11, %13 : vector<32x256xf32>
    %cst_10 = arith.constant 0.000000e+00 : f32
    %15 = vector.broadcast %cst_10 : f32 to vector<32x256xf32>
    %16 = arith.maximumf %14, %15 : vector<32x256xf32>
    %17 = arith.truncf %16 : vector<32x256xf32> to vector<32x256xbf16>
    %c64 = arith.constant 64 : index
    %c0_11 = arith.constant 0 : index
    %18 = vector.load %arg2[%c64, %c0_11] : memref<112x32xbf16, #tpu.memory_space<vmem>>, vector<32x32xbf16>
    %cst_12 = arith.constant dense<0.000000e+00> : vector<32x256xf32>
    %19 = tpu.matmul %18, %17, %cst_12 {dimension_numbers = #tpu.dot_dimension_numbers<[1], [0], [0], [1], [0, 0, 1, 1], [], []>} : vector<32x32xbf16>, vector<32x256xbf16>, vector<32x256xf32> -> vector<32x256xf32>
    %c64_13 = arith.constant 64 : index
    %c0_14 = arith.constant 0 : index
    %20 = vector.load %arg3[%c64_13, %c0_14] : memref<112x1xf32, #tpu.memory_space<vmem>>, vector<32x1xf32>
    %21 = vector.broadcast %20 : vector<32x1xf32> to vector<32x256xf32>
    %22 = arith.addf %19, %21 : vector<32x256xf32>
    %cst_15 = arith.constant 0.000000e+00 : f32
    %23 = vector.broadcast %cst_15 : f32 to vector<32x256xf32>
    %24 = arith.maximumf %22, %23 : vector<32x256xf32>
    %25 = arith.truncf %24 : vector<32x256xf32> to vector<32x256xbf16>
    %c96 = arith.constant 96 : index
    %c0_16 = arith.constant 0 : index
    %26 = vector.load %arg2[%c96, %c0_16] : memref<112x32xbf16, #tpu.memory_space<vmem>>, vector<16x32xbf16>
    %cst_17 = arith.constant dense<0.000000e+00> : vector<16x256xf32>
    %27 = tpu.matmul %26, %25, %cst_17 {dimension_numbers = #tpu.dot_dimension_numbers<[1], [0], [0], [1], [0, 0, 1, 1], [], []>} : vector<16x32xbf16>, vector<32x256xbf16>, vector<16x256xf32> -> vector<16x256xf32>
    %c96_18 = arith.constant 96 : index
    %c0_19 = arith.constant 0 : index
    %28 = vector.load %arg3[%c96_18, %c0_19] : memref<112x1xf32, #tpu.memory_space<vmem>>, vector<16x1xf32>
    %29 = vector.broadcast %28 : vector<16x1xf32> to vector<16x256xf32>
    %30 = arith.addf %27, %29 : vector<16x256xf32>
    %31 = tpu.transpose %30, [1, 0] : vector<16x256xf32> -> vector<256x16xf32>
    %c0_20 = arith.constant 0 : index
    %c0_21 = arith.constant 0 : index
    %32 = vector.load %arg4[%c0_20, %c0_21] : memref<256x16xf32, #tpu.memory_space<vmem>>, vector<256x16xf32>
    tpu.vector_store %arg4[%c0_20, %c0_21], %31 {strides = array<i32>} : memref<256x16xf32, #tpu.memory_space<vmem>>, vector<256x16xf32>,
    return
  }
  func.func @transform_0(%arg0: i32) -> (i32, i32) {
    %c0_i32 = arith.constant 0 : i32
    %c0_i32_0 = arith.constant 0 : i32
    return %arg0, %c0_i32 : i32, i32
  }
  func.func @transform_1(%arg0: i32) -> (i32, i32) {
    %c0_i32 = arith.constant 0 : i32
    %c0_i32_0 = arith.constant 0 : i32
    %c0_i32_1 = arith.constant 0 : i32
    return %c0_i32, %c0_i32_0 : i32, i32
  }
  func.func @transform_2(%arg0: i32) -> (i32, i32) {
    %c0_i32 = arith.constant 0 : i32
    %c0_i32_0 = arith.constant 0 : i32
    %c0_i32_1 = arith.constant 0 : i32
    return %c0_i32, %c0_i32_0 : i32, i32
  }
  func.func @transform_3(%arg0: i32) -> (i32, i32) {
    %c0_i32 = arith.constant 0 : i32
    %c0_i32_0 = arith.constant 0 : i32
    return %arg0, %c0_i32 : i32, i32
  }
}

</mosaic_0001>

<bundles_post_ra>
// kernel: tpu_custom_call.1
= control target key start
LH: loop header
LB: loop body
LE: loop exit
PB: predicated region body
PF: predicated region fallthrough
CT: control target
= control target key end

     0   :  { %vm101_vm0 = vcmask 261120   ;;  %v658_v3 = vmov 0   ;;  %vm568_vm1 = vcmask 130048   ;;  %s1002_s0 = inlined_call_operand.vmem [shape: f32[256,32], index: 0, kind: input, shape index: {}]   ;;  %s1003_s1 = inlined_call_operand.vmem [shape: bf16[112,32], index: 1, kind: input, shape index: {}]   ;;  %s1004_s2 = inlined_call_operand.vmem [shape: f32[112,1], index: 2, kind: input, shape index: {}]   ;;  %s1005_s3 = inlined_call_operand.vmem [shape: f32[256,16], index: 3, kind: output, shape index: {}]  }
   0x1   :  { %v45_v0 = vld [vmem:[%s1002_s0 + $0xf0] sm:$0xff]  ;;  %v46_v1 = vld [vmem:[%s1002_s0 + $0xf8] sm:$0xff]  ;;  %649 = vset.pattern.permute.xlu0 %v658_v3  ;;  %650 = vset.pattern.permute.xlu1 %v658_v3  ;;  %v43_v6 = vld [vmem:[%s1002_s0 + $0xe0] sm:$0xff] }
   0x2   :  { %v29_v2 = vld [vmem:[%s1002_s0 + $0x70] sm:$0xff]  ;;  %v62_v4 = vpack.c.bf16 %v46_v1, %v45_v0  ;;  %v30_v5 = vld [vmem:[%s1002_s0 + $0x78] sm:$0xff]  ;;  %v44_v7 = vld [vmem:[%s1002_s0 + $0xe8] sm:$0xff]  ;;  %297 = vmatprep.mubr.bf16.mxu1 %v658_v3 }
   0x3   :  { %v54_v8 = vpack.c.bf16 %v30_v5, %v29_v2  ;;  %v61_v9 = vpack.c.bf16 %v44_v7, %v43_v6  ;;  %v27_v10 = vld [vmem:[%s1002_s0 + $0x60] sm:$0xff]  ;;  %v28_v11 = vld [vmem:[%s1002_s0 + $0x68] sm:$0xff]  ;;  %v41_v14 = vld [vmem:[%s1002_s0 + $0xd0] sm:$0xff] }
   0x4   :  { %639 = vmatprep.subr.msk.bf16.mxu0 %vm101_vm0, %v62_v4  ;;  %v53_v13 = vpack.c.bf16 %v28_v11, %v27_v10  ;;  %v42_v15 = vld [vmem:[%s1002_s0 + $0xd8] sm:$0xff]  ;;  %v25_v18 = vld [vmem:[%s1002_s0 + $0x50] sm:$0xff]  ;;  %v725_v20 = vld [vmem:[%s1003_s1] sm:$0xff]  }
   0x5   :  { %v130_v12 = vsel %vm101_vm0, %v54_v8, 0  ;;  %v60_v17 = vpack.c.bf16 %v42_v15, %v41_v14  ;;  %v26_v19 = vld [vmem:[%s1002_s0 + $0x58] sm:$0xff]  ;;  %v69_v21 = vld [vmem:[%s1004_s2 + $0x10] sm:$0xff]  ;;  %635 = vmatprep.mubr.msk.bf16.mxu0 %vm101_vm0, %v725_v20  ;;  %v67_v23 = vld [vmem:[%s1004_s2] sm:$0xff] }
   0x6   :  { %620 = vmatpush3.bf16.xpose.msra.mxu0 %v130_v12  ;;  %v127_v16 = vsel %vm101_vm0, %v53_v13, 0  ;;  %v52_v22 = vpack.c.bf16 %v26_v19, %v25_v18  ;;  %83 = vperm.xlu0 %649, %v69_v21   ;;  %v39_v24 = vld [vmem:[%s1002_s0 + $0xc0] sm:$0xff]  ;;  %v40_v25 = vld [vmem:[%s1002_s0 + $0xc8] sm:$0xff]  ;;  %v70_v26 = vld [vmem:[%s1004_s2 + $0x18] sm:$0xff] }
   0x7   :  { %640 = vmatprep.subr.msk.bf16.mxu0 %vm101_vm0, %v61_v9  ;;  %73 = vperm.xlu1 %650, %v67_v23   ;;  %v68_v27 = vld [vmem:[%s1004_s2 + $0x8] sm:$0xff]  ;;  %v23_v29 = vld [vmem:[%s1002_s0 + $0x40] sm:$0xff]  ;;  %v227_v31 = vld [vmem:[%s1004_s2 + $0x30] sm:$0xff]  ;;  %v59_v32 = vpack.c.bf16 %v40_v25, %v39_v24 }
   0x8   :  { %v124_v28 = vsel %vm101_vm0, %v52_v22, 0  ;;  %v24_v30 = vld [vmem:[%s1002_s0 + $0x48] sm:$0xff]  ;;  %v228_v33 = vld [vmem:[%s1004_s2 + $0x38] sm:$0xff]  ;;  %v37_v35 = vld [vmem:[%s1002_s0 + $0xb0] sm:$0xff] }
   0x9   :  { %v51_v34 = vpack.c.bf16 %v24_v30, %v23_v29  ;;  %v38_v36 = vld [vmem:[%s1002_s0 + $0xb8] sm:$0xff]  ;;  %v225_v37 = vld [vmem:[%s1004_s2 + $0x20] sm:$0xff]  ;;  %v226_v38 = vld [vmem:[%s1004_s2 + $0x28] sm:$0xff] }
   0xa   :  { %88 = vperm.xlu0 %649, %v70_v26   ;;  %v58_v40 = vpack.c.bf16 %v38_v36, %v37_v35  ;;  %v21_v41 = vld [vmem:[%s1002_s0 + $0x30] sm:$0xff]  ;;  %v22_v42 = vld [vmem:[%s1002_s0 + $0x38] sm:$0xff]  ;;  %v35_v46 = vld [vmem:[%s1002_s0 + $0xa0] sm:$0xff] }
   0xb   :  { %78 = vperm.xlu1 %650, %v68_v27   ;;  %v121_v39 = vsel %vm101_vm0, %v51_v34, 0  ;;  %v336_v43 = vld [vmem:[%s1004_s2 + $0x50] sm:$0xff]  ;;  %v337_v44 = vld [vmem:[%s1004_s2 + $0x58] sm:$0xff]  ;;  %v50_v45 = vpack.c.bf16 %v22_v42, %v21_v41  ;;  %v36_v47 = vld [vmem:[%s1002_s0 + $0xa8] sm:$0xff] }
   0xc   :  { %v334_v48 = vld [vmem:[%s1004_s2 + $0x40] sm:$0xff]  ;;  %v335_v49 = vld [vmem:[%s1004_s2 + $0x48] sm:$0xff]  ;;  %v57_v51 = vpack.c.bf16 %v36_v47, %v35_v46  ;;  %v33_v57 = vld [vmem:[%s1002_s0 + $0x90] sm:$0xff] }
   0xd   :  { %v118_v50 = vsel %vm101_vm0, %v50_v45, 0  ;;  %v19_v52 = vld [vmem:[%s1002_s0 + $0x20] sm:$0xff]  ;;  %v20_v53 = vld [vmem:[%s1002_s0 + $0x28] sm:$0xff]  ;;  %v34_v58 = vld [vmem:[%s1002_s0 + $0x98] sm:$0xff] }
   0xe   :  { %622 = vmatpush3.bf16.xpose.msra.mxu0 %v127_v16  ;;  %241 = vperm.xlu0 %649, %v227_v31   ;;  %v441_v54 = vld [vmem:[%s1004_s2 + $0x60] sm:$0xff]  ;;  %v442_v55 = vld [vmem:[%s1004_s2 + $0x68] sm:$0xff]  ;;  %v49_v56 = vpack.c.bf16 %v20_v53, %v19_v52  ;;  %v56_v60 = vpack.c.bf16 %v34_v58, %v33_v57  ;;  %v17_v61 = vld [vmem:[%s1002_s0 + $0x10] sm:$0xff] }
   0xf   :  { %641 = vmatprep.subr.msk.bf16.mxu0 %vm101_vm0, %v60_v17  ;;  %246 = vperm.xlu1 %650, %v228_v33   ;;  %v18_v62 = vld [vmem:[%s1002_s0 + $0x18] sm:$0xff]  ;;  %v31_v0 = vld [vmem:[%s1002_s0 + $0x80] sm:$0xff]  ;;  %v32_v1 = vld [vmem:[%s1002_s0 + $0x88] sm:$0xff] }
  0x10   :  { %v115_v59 = vsel %vm101_vm0, %v49_v56, 0  ;;  %v48_v63 = vpack.c.bf16 %v18_v62, %v17_v61  ;;  %v55_v4 = vpack.c.bf16 %v32_v1, %v31_v0  ;;  %v15_v5 = vld [vmem:[%s1002_s0] sm:$0xff]  ;;  %v16_v6 = vld [vmem:[%s1002_s0 + $0x8] sm:$0xff]  ;;  %v653_v42 = vld [vmem:[%s1003_s1 + $0x10] sm:$0xff]  }
  0x11   :  { %v47_v7 = vpack.c.bf16 %v16_v6, %v15_v5  ;;  %v652_v9 = vld [vmem:[%s1003_s1 + $0x8] sm:$0xff]  }
  0x12   :  { %231 = vperm.xlu0 %649, %v225_v37   ;;  %v112_v2 = vsel %vm101_vm0, %v48_v63, 0 }
  0x13   :  { %236 = vperm.xlu1 %650, %v226_v38   ;;  %v109_v8 = vsel %vm101_vm0, %v47_v7, 0 }
  0x16   :  { %624 = vmatpush3.bf16.xpose.msra.mxu0 %v124_v28  ;;  %350 = vperm.xlu0 %649, %v336_v43   ;;  %v654_v43 = vld [vmem:[%s1003_s1 + $0x18] sm:$0xff]  }
  0x17   :  { %642 = vmatprep.subr.msk.bf16.mxu0 %vm101_vm0, %v59_v32  ;;  %355 = vperm.xlu1 %650, %v337_v44  }
  0x1a   :  { %340 = vperm.xlu0 %649, %v334_v48  }
  0x1b   :  { %345 = vperm.xlu1 %650, %v335_v49  }
  0x1e   :  { %626 = vmatpush3.bf16.xpose.msra.mxu0 %v121_v39  ;;  %445 = vperm.xlu0 %649, %v441_v54  }
  0x1f   :  { %643 = vmatprep.subr.msk.bf16.mxu0 %vm101_vm0, %v58_v40  ;;  %450 = vperm.xlu1 %650, %v442_v55  }
  0x26   :  { %628 = vmatpush3.bf16.xpose.msra.mxu0 %v118_v50 }
  0x27   :  { %644 = vmatprep.subr.msk.bf16.mxu0 %vm101_vm0, %v57_v51 }
  0x2e   :  { %630 = vmatpush3.bf16.xpose.msra.mxu0 %v115_v59 }
  0x2f   :  { %645 = vmatprep.subr.msk.bf16.mxu0 %vm101_vm0, %v56_v60 }
  0x36   :  { %632 = vmatpush3.bf16.xpose.msra.mxu0 %v112_v2 }
  0x37   :  { %646 = vmatprep.subr.msk.bf16.mxu0 %vm101_vm0, %v55_v4 }
  0x3e   :  { %634 = vmatpush3.bf16.xpose.msra.mxu0 %v109_v8 }
  0x45   :  { %636 = vmatmul.mubr.msk.bf16.vlgmr.msra.gmra.mxu0 %vm101_vm0, %v725_v20 }
  0x46   :  { %637 = vmatprep.mubr.msk.bf16.mxu0 %vm101_vm0, %v652_v9 }
  0x4d   :  { %638 = vmatmul.mubr.msk.bf16.gmra.mxu0 %vm101_vm0, %v652_v9 }
  0x81   :  { %v84_v13 = vpop.permute.xlu0 %83 }
  0x82   :  { %v74_v14 = vpop.permute.xlu1 %73 }
  0x85   :  { %v89_v18 = vpop.permute.xlu0 %88 }
  0x86   :  { %v79_v19 = vpop.permute.xlu1 %78 }
  0x89   :  { %v242_v49 = vpop.permute.xlu0 %241 }
  0x8a   :  { %v247_v47 = vpop.permute.xlu1 %246 }
  0x8d   :  { %v232_v57 = vpop.permute.xlu0 %231 }
  0x8e   :  { %v237_v52 = vpop.permute.xlu1 %236 }
 0x105   :  { %v190_v10 = vpop.f32.mrf.mxu0 }
 0x106   :  { %v191_v33 = vadd.f32 %v190_v10, %v74_v14 }
 0x107   :  { %v192_v11 = vpop.f32.mrf.mxu0 }
 0x108   :  { %v193_v26 = vadd.f32 %v192_v11, %v74_v14  ;;  %v209_v40 = vmax.f32 %v191_v33, 0.0  ;;  %v656_v14 = vld [vmem:[%s1003_s1 + $0x28] sm:$0xff]  }
 0x109   :  { %v194_v12 = vpop.f32.mrf.mxu0 }
 0x10a   :  { %v195_v28 = vadd.f32 %v194_v12, %v79_v19  ;;  %v210_v35 = vmax.f32 %v193_v26, 0.0 }
 0x10b   :  { %v196_v15 = vpop.f32.mrf.mxu0 }
 0x10c   :  { %v197_v22 = vadd.f32 %v196_v15, %v79_v19  ;;  %v211_v37 = vmax.f32 %v195_v28, 0.0 }
 0x10d   :  { %v200_v16 = vpop.f32.mrf.mxu0 }
 0x10e   :  { %v201_v25 = vadd.f32 %v200_v16, %v84_v13  ;;  %v212_v30 = vmax.f32 %v197_v22, 0.0  ;;  %v217_v41 = vpack.c.bf16 %v211_v37, %v209_v40 }
 0x10f   :  { %v202_v17 = vpop.f32.mrf.mxu0 }
 0x110   :  { %v203_v23 = vadd.f32 %v202_v17, %v84_v13  ;;  %v213_v34 = vmax.f32 %v201_v25, 0.0  ;;  %v218_v39 = vpack.c.bf16 %v212_v30, %v210_v35  ;;  %v655_v13 = vld [vmem:[%s1003_s1 + $0x20] sm:$0xff]  }
 0x111   :  { %v204_v21 = vpop.f32.mrf.mxu0 }
 0x112   :  { %v205_v24 = vadd.f32 %v204_v21, %v89_v18  ;;  %v214_v31 = vmax.f32 %v203_v23, 0.0  ;;  %v351_v21 = vpop.permute.xlu0 %350 }
 0x113   :  { %v206_v20 = vpop.f32.mrf.mxu0 }
 0x114   :  { %v207_v27 = vadd.f32 %v206_v20, %v89_v18  ;;  %v215_v29 = vmax.f32 %v205_v24, 0.0  ;;  %v356_v18 = vpop.permute.xlu1 %355 }
 0x116   :  { %v216_v32 = vmax.f32 %v207_v27, 0.0  ;;  %v219_v38 = vpack.c.bf16 %v215_v29, %v213_v34  ;;  %v341_v28 = vpop.permute.xlu0 %340 }
 0x118   :  { %v220_v36 = vpack.c.bf16 %v216_v32, %v214_v31  ;;  %v346_v24 = vpop.permute.xlu1 %345 }
 0x11a   :  { %277 = vmatprep.subr.bf16.mxu1 %v220_v36 }
 0x11b   :  { %278 = vmatpush1.bf16.msra.mxu1 %v219_v38 }
 0x11c   :  { %279 = vmatprep.subr.bf16.mxu1 %v218_v39 }
 0x11f   :  { %280 = vmatpush1.bf16.msra.mxu1 %v217_v41 }
 0x122   :  { %611 = vmatmul.mubr.msk.bf16.vlgmr.msra.gmra.mxu1 %vm101_vm0, %v653_v42 }
 0x123   :  { %307 = vmatprep.mubr.bf16.mxu1 %v658_v3 }
 0x12a   :  { %612 = vmatmul.mubr.msk.bf16.gmra.mxu1 %vm101_vm0, %v654_v43 }
 0x12b   :  { %406 = vmatprep.mubr.bf16.mxu1 %v658_v3 }
 0x1e2   :  { %v299_v44 = vpop.f32.mrf.mxu1 }
 0x1e3   :  { %v300_v4 = vadd.f32 %v299_v44, %v232_v57 }
 0x1e4   :  { %v301_v45 = vpop.f32.mrf.mxu1 }
 0x1e5   :  { %v302_v60 = vadd.f32 %v301_v45, %v232_v57  ;;  %v318_v11 = vmax.f32 %v300_v4, 0.0 }
 0x1e6   :  { %v303_v46 = vpop.f32.mrf.mxu1 }
 0x1e7   :  { %v304_v62 = vadd.f32 %v303_v46, %v237_v52  ;;  %v319_v6 = vmax.f32 %v302_v60, 0.0  ;;  %v657_v46 = vld [vmem:[%s1003_s1 + $0x30] sm:$0xff]  }
 0x1e8   :  { %v305_v48 = vpop.f32.mrf.mxu1 }
 0x1e9   :  { %v306_v54 = vadd.f32 %v305_v48, %v237_v52  ;;  %v320_v8 = vmax.f32 %v304_v62, 0.0  ;;  %v451_v52 = vpop.permute.xlu1 %450 }
 0x1ea   :  { %v309_v50 = vpop.f32.mrf.mxu1 }
 0x1eb   :  { %v310_v58 = vadd.f32 %v309_v50, %v242_v49  ;;  %v321_v0 = vmax.f32 %v306_v54, 0.0  ;;  %v326_v12 = vpack.c.bf16 %v320_v8, %v318_v11 }
 0x1ec   :  { %v311_v51 = vpop.f32.mrf.mxu1 }
 0x1ed   :  { %v312_v55 = vadd.f32 %v311_v51, %v242_v49  ;;  %v322_v5 = vmax.f32 %v310_v58, 0.0  ;;  %v327_v10 = vpack.c.bf16 %v321_v0, %v319_v6 }
 0x1ee   :  { %v313_v53 = vpop.f32.mrf.mxu1 }
 0x1ef   :  { %v314_v56 = vadd.f32 %v313_v53, %v247_v47  ;;  %v323_v1 = vmax.f32 %v312_v55, 0.0 }
 0x1f0   :  { %v315_v59 = vpop.f32.mrf.mxu1 }
 0x1f1   :  { %v316_v61 = vadd.f32 %v315_v59, %v247_v47  ;;  %v324_v63 = vmax.f32 %v314_v56, 0.0  ;;  %v446_v47 = vpop.permute.xlu0 %445 }
 0x1f3   :  { %v325_v2 = vmax.f32 %v316_v61, 0.0  ;;  %v328_v9 = vpack.c.bf16 %v324_v63, %v322_v5 }
 0x1f5   :  { %v329_v7 = vpack.c.bf16 %v325_v2, %v323_v1 }
 0x1f7   :  { %386 = vmatprep.subr.bf16.mxu1 %v329_v7 }
 0x1f8   :  { %387 = vmatpush1.bf16.msra.mxu1 %v328_v9 }
 0x1f9   :  { %388 = vmatprep.subr.bf16.mxu1 %v327_v10 }
 0x1fc   :  { %389 = vmatpush1.bf16.msra.mxu1 %v326_v12 }
 0x1ff   :  { %615 = vmatmul.mubr.msk.bf16.vlgmr.msra.gmra.mxu1 %vm101_vm0, %v655_v13 }
 0x200   :  { %416 = vmatprep.mubr.bf16.mxu1 %v658_v3 }
 0x207   :  { %616 = vmatmul.mubr.msk.bf16.gmra.mxu1 %vm101_vm0, %v656_v14 }
 0x208   :  { %493 = vmatprep.mubr.bf16.mxu1 %v658_v3 }
 0x2bf   :  { %v408_v15 = vpop.f32.mrf.mxu1 }
 0x2c0   :  { %v409_v37 = vadd.f32 %v408_v15, %v341_v28 }
 0x2c1   :  { %v410_v16 = vpop.f32.mrf.mxu1 }
 0x2c2   :  { %v411_v31 = vadd.f32 %v410_v16, %v341_v28  ;;  %v427_v44 = vmax.f32 %v409_v37, 0.0 }
 0x2c3   :  { %v412_v17 = vpop.f32.mrf.mxu1 }
 0x2c4   :  { %v413_v33 = vadd.f32 %v412_v17, %v346_v24  ;;  %v428_v39 = vmax.f32 %v411_v31, 0.0 }
 0x2c5   :  { %v414_v19 = vpop.f32.mrf.mxu1 }
 0x2c6   :  { %v415_v20 = vadd.f32 %v414_v19, %v346_v24  ;;  %v429_v41 = vmax.f32 %v413_v33, 0.0 }
 0x2c7   :  { %v418_v22 = vpop.f32.mrf.mxu1 }
 0x2c8   :  { %v419_v29 = vadd.f32 %v418_v22, %v351_v21  ;;  %v430_v34 = vmax.f32 %v415_v20, 0.0  ;;  %v435_v45 = vpack.c.bf16 %v429_v41, %v427_v44 }
 0x2c9   :  { %v420_v23 = vpop.f32.mrf.mxu1 }
 0x2ca   :  { %v421_v26 = vadd.f32 %v420_v23, %v351_v21  ;;  %v431_v38 = vmax.f32 %v419_v29, 0.0  ;;  %v436_v43 = vpack.c.bf16 %v430_v34, %v428_v39 }
 0x2cb   :  { %v422_v25 = vpop.f32.mrf.mxu1 }
 0x2cc   :  { %v423_v27 = vadd.f32 %v422_v25, %v356_v18  ;;  %v432_v35 = vmax.f32 %v421_v26, 0.0 }
 0x2cd   :  { %v424_v30 = vpop.f32.mrf.mxu1 }
 0x2ce   :  { %v425_v32 = vadd.f32 %v424_v30, %v356_v18  ;;  %v433_v3 = vmax.f32 %v423_v27, 0.0 }
 0x2d0   :  { %v434_v36 = vmax.f32 %v425_v32, 0.0  ;;  %v437_v42 = vpack.c.bf16 %v433_v3, %v431_v38 }
 0x2d2   :  { %v438_v40 = vpack.c.bf16 %v434_v36, %v432_v35 }
 0x2d4   :  { %473 = vmatprep.subr.bf16.mxu1 %v438_v40 }
 0x2d5   :  { %474 = vmatpush1.bf16.msra.mxu1 %v437_v42 }
 0x2d6   :  { %475 = vmatprep.subr.bf16.mxu1 %v436_v43 }
 0x2d9   :  { %476 = vmatpush1.bf16.msra.mxu1 %v435_v45 }
 0x2dc   :  { %618 = vmatmul.mubr.msk.bf16.vlgmr.msra.gmra.mxu1 %vm101_vm0, %v657_v46 }
 0x39c   :  { %v495_v48 = vpop.f32.mrf.mxu1 }
 0x39d   :  { %v496_v49 = vadd.f32 %v495_v48, %v446_v47 }
 0x39e   :  { %v497_v50 = vpop.f32.mrf.mxu1 }
 0x39f   :  { %v498_v51 = vadd.f32 %v497_v50, %v446_v47  ;;  %504 = vxpose.xlu0.b32.start [1/2] (short) %v496_v49, 128 }
 0x3a0   :  { %v499_v53 = vpop.f32.mrf.mxu1 }
 0x3a1   :  { %v500_v54 = vadd.f32 %v499_v53, %v451_v52  ;;  %536 = vxpose.xlu1.b32.start [1/2] (short) %v498_v51, 128 }
 0x3a2   :  { %v501_v55 = vpop.f32.mrf.mxu1 }
 0x3a3   :  { %v502_v56 = vadd.f32 %v501_v55, %v451_v52  ;;  %505 = vxpose.xlu0.b32.end [2/2] (short) %v500_v54, 128 }
 0x3a5   :  { %537 = vxpose.xlu1.b32.end [2/2] (short) %v502_v56, 128 }
 0x41b   :  { %v520_v57 = vpop.trf.xlu0 }
 0x41c   :  { %569 = vst.msk [vmem:[%s1005_s3] sm:$0xff] %vm568_vm1, %v520_v57 }
 0x41d   :  { %v552_v58 = vpop.trf.xlu1 }
 0x41e   :  { %585 = vst.msk [vmem:[%s1005_s3 + $0x80] sm:$0xff] %vm568_vm1, %v552_v58 }
 0x41f   :  { %v521_v59 = vpop.trf.xlu0 }
 0x420   :  { %570 = vst.msk [vmem:[%s1005_s3 + $0x8] sm:$0xff] %vm568_vm1, %v521_v59 }
 0x421   :  { %v553_v60 = vpop.trf.xlu1 }
 0x422   :  { %586 = vst.msk [vmem:[%s1005_s3 + $0x88] sm:$0xff] %vm568_vm1, %v553_v60 }
 0x423   :  { %v522_v61 = vpop.trf.xlu0 }
 0x424   :  { %571 = vst.msk [vmem:[%s1005_s3 + $0x10] sm:$0xff] %vm568_vm1, %v522_v61 }
 0x425   :  { %v554_v62 = vpop.trf.xlu1 }
 0x426   :  { %587 = vst.msk [vmem:[%s1005_s3 + $0x90] sm:$0xff] %vm568_vm1, %v554_v62 }
 0x427   :  { %v523_v63 = vpop.trf.xlu0 }
 0x428   :  { %572 = vst.msk [vmem:[%s1005_s3 + $0x18] sm:$0xff] %vm568_vm1, %v523_v63 }
 0x429   :  { %v555_v0 = vpop.trf.xlu1 }
 0x42a   :  { %588 = vst.msk [vmem:[%s1005_s3 + $0x98] sm:$0xff] %vm568_vm1, %v555_v0 }
 0x42b   :  { %v524_v1 = vpop.trf.xlu0 }
 0x42c   :  { %573 = vst.msk [vmem:[%s1005_s3 + $0x20] sm:$0xff] %vm568_vm1, %v524_v1 }
 0x42d   :  { %v556_v2 = vpop.trf.xlu1 }
 0x42e   :  { %589 = vst.msk [vmem:[%s1005_s3 + $0xa0] sm:$0xff] %vm568_vm1, %v556_v2 }
 0x42f   :  { %v525_v4 = vpop.trf.xlu0 }
 0x430   :  { %574 = vst.msk [vmem:[%s1005_s3 + $0x28] sm:$0xff] %vm568_vm1, %v525_v4 }
 0x431   :  { %v557_v5 = vpop.trf.xlu1 }
 0x432   :  { %590 = vst.msk [vmem:[%s1005_s3 + $0xa8] sm:$0xff] %vm568_vm1, %v557_v5 }
 0x433   :  { %v526_v6 = vpop.trf.xlu0 }
 0x434   :  { %575 = vst.msk [vmem:[%s1005_s3 + $0x30] sm:$0xff] %vm568_vm1, %v526_v6 }
 0x435   :  { %v558_v7 = vpop.trf.xlu1 }
 0x436   :  { %591 = vst.msk [vmem:[%s1005_s3 + $0xb0] sm:$0xff] %vm568_vm1, %v558_v7 }
 0x437   :  { %v527_v8 = vpop.trf.xlu0 }
 0x438   :  { %576 = vst.msk [vmem:[%s1005_s3 + $0x38] sm:$0xff] %vm568_vm1, %v527_v8 }
 0x439   :  { %v559_v9 = vpop.trf.xlu1 }
 0x43a   :  { %592 = vst.msk [vmem:[%s1005_s3 + $0xb8] sm:$0xff] %vm568_vm1, %v559_v9 }
 0x43b   :  { %v528_v10 = vpop.trf.xlu0 }
 0x43c   :  { %577 = vst.msk [vmem:[%s1005_s3 + $0x40] sm:$0xff] %vm568_vm1, %v528_v10 }
 0x43d   :  { %v560_v11 = vpop.trf.xlu1 }
 0x43e   :  { %593 = vst.msk [vmem:[%s1005_s3 + $0xc0] sm:$0xff] %vm568_vm1, %v560_v11 }
 0x43f   :  { %v529_v12 = vpop.trf.xlu0 }
 0x440   :  { %578 = vst.msk [vmem:[%s1005_s3 + $0x48] sm:$0xff] %vm568_vm1, %v529_v12 }
 0x441   :  { %v561_v13 = vpop.trf.xlu1 }
 0x442   :  { %594 = vst.msk [vmem:[%s1005_s3 + $0xc8] sm:$0xff] %vm568_vm1, %v561_v13 }
 0x443   :  { %v530_v14 = vpop.trf.xlu0 }
 0x444   :  { %579 = vst.msk [vmem:[%s1005_s3 + $0x50] sm:$0xff] %vm568_vm1, %v530_v14 }
 0x445   :  { %v562_v15 = vpop.trf.xlu1 }
 0x446   :  { %595 = vst.msk [vmem:[%s1005_s3 + $0xd0] sm:$0xff] %vm568_vm1, %v562_v15 }
 0x447   :  { %v531_v16 = vpop.trf.xlu0 }
 0x448   :  { %580 = vst.msk [vmem:[%s1005_s3 + $0x58] sm:$0xff] %vm568_vm1, %v531_v16 }
 0x449   :  { %v563_v17 = vpop.trf.xlu1 }
 0x44a   :  { %596 = vst.msk [vmem:[%s1005_s3 + $0xd8] sm:$0xff] %vm568_vm1, %v563_v17 }
 0x44b   :  { %v532_v18 = vpop.trf.xlu0 }
 0x44c   :  { %581 = vst.msk [vmem:[%s1005_s3 + $0x60] sm:$0xff] %vm568_vm1, %v532_v18 }
 0x44d   :  { %v564_v19 = vpop.trf.xlu1 }
 0x44e   :  { %597 = vst.msk [vmem:[%s1005_s3 + $0xe0] sm:$0xff] %vm568_vm1, %v564_v19 }
 0x44f   :  { %v533_v21 = vpop.trf.xlu0 }
 0x450   :  { %582 = vst.msk [vmem:[%s1005_s3 + $0x68] sm:$0xff] %vm568_vm1, %v533_v21 }
 0x451   :  { %v565_v22 = vpop.trf.xlu1 }
 0x452   :  { %598 = vst.msk [vmem:[%s1005_s3 + $0xe8] sm:$0xff] %vm568_vm1, %v565_v22 }
 0x453   :  { %v534_v23 = vpop.trf.xlu0 }
 0x454   :  { %583 = vst.msk [vmem:[%s1005_s3 + $0x70] sm:$0xff] %vm568_vm1, %v534_v23 }
 0x455   :  { %v566_v24 = vpop.trf.xlu1 }
 0x456   :  { %599 = vst.msk [vmem:[%s1005_s3 + $0xf0] sm:$0xff] %vm568_vm1, %v566_v24 }
 0x457   :  { %v535_v25 = vpop.trf.xlu0 }
 0x458   :  { %584 = vst.msk [vmem:[%s1005_s3 + $0x78] sm:$0xff] %vm568_vm1, %v535_v25 }
 0x459   :  { %v567_v20 = vpop.trf.xlu1 }
 0x45a   :  { %600 = vst.msk [vmem:[%s1005_s3 + $0xf8] sm:$0xff] %vm568_vm1, %v567_v20 }

</bundles_post_ra>
